<compile_context>
chip_gen: v7x
topology: tpu7x:2x2x1
jax: 0.10.0
libtpu: 0.0.40
codegen_flags: <defaults>
</compile_context>

<pallas_src>
import jax
import jax.numpy as jnp
from jax.experimental import pallas as pl
from jax.experimental.pallas import tpu as pltpu

_LANES = 128


def _pack_mask_bits(mask_table):
    """Pack a binary (n_V, 1) mask into ceil(n_V/32) int32 words.

    Bit (v % 32) of word (v // 32) == (mask_table[v, 0] != 0).
    """
    n_V = mask_table.shape[0]
    n_words = -(-n_V // 32)
    bits = (mask_table.reshape(-1) != 0).astype(jnp.uint32)
    bits = jnp.pad(bits, (0, n_words * 32 - n_V))
    shifts = jnp.arange(32, dtype=jnp.uint32)
    words = jnp.sum(bits.reshape(n_words, 32) << shifts, axis=1, dtype=jnp.uint32)
    return jax.lax.bitcast_convert_type(words, jnp.int32)


def _word_weight_kernel(packed_ref, nrows_ref, ids_ref, out_ref):
    # packed_ref: (n_words,) int32 SMEM -- bit-packed binary mask table (resident)
    # nrows_ref:  (1,) int32 SMEM       -- number of valid rows in the global layout
    # ids_ref:    (rows_blk, 128) int32 VMEM tile of flattened token ids
    # out_ref:    (rows_blk, 128) float32 VMEM tile of gathered mask values
    n_words = packed_ref.shape[0]
    rows_blk = ids_ref.shape[0]
    chunk = min(64, rows_blk)          # 64x128 int32 = 8 vregs/value -> no spills
    n_chunks = rows_blk // chunk       # wrapper guarantees chunk | rows_blk
    base_row = pl.program_id(0) * rows_blk
    rows_valid = nrows_ref[0]

    def do_chunk(c, carry):
        r0 = pl.multiple_of(c * chunk, chunk)

        @pl.when(base_row + r0 < rows_valid)   # skip pure-padding tail chunks
        def _():
            ids = ids_ref[pl.ds(r0, chunk), :]                  # (chunk, 128) int32
            word_idx = jnp.right_shift(ids, 5)                  # id // 32
            bit_idx = jnp.bitwise_and(ids, 31)                  # id % 32
            # Resolve the packed 32-bit word per token.  OOB / negative ids
            # match no word -> w stays 0 -> output 0.0 (same as v1 behavior).
            w = jnp.zeros((chunk, _LANES), jnp.int32)
            if n_words <= 16:
                # Static unroll: compare constants become immediates and the
                # LLO scheduler gets independent cmp/select chains.
                for v in range(n_words):
                    w = jnp.where(word_idx == v, packed_ref[v], w)
            else:
                # TODO(synk): for very large vocabs this O(n_V/32) select chain
                # should become a real gather (DMA / one-hot) instead.
                def sel(v, acc):
                    return jnp.where(word_idx == v, packed_ref[v], acc)
                w = jax.lax.fori_loop(0, n_words, sel, w, unroll=8)
            bit = jnp.bitwise_and(jnp.right_shift(w, bit_idx), 1)
            out_ref[pl.ds(r0, chunk), :] = bit.astype(jnp.float32)

        return carry

    jax.lax.fori_loop(0, n_chunks, do_chunk, 0)


def word_weight_forward(ids, mask_table, *, rows_per_block=1024,
                        min_kernel_tokens=2048):
    """Pallas equivalent of WordWeight.forward (== nn.Embedding(n_V, 1) lookup).

    ids:        int array of shape (B, S) -- token indices.
    mask_table: float32 array of shape (n_V, 1) -- binary {0,1} "attackable" mask.
    returns:    float32 array of shape (B, S, 1).

    Notes:
      * Out-of-range / negative ids produce 0.0 (torch.nn.Embedding would error).
      * The kernel path assumes a binary mask (any nonzero entry -> 1.0), which
        matches WordWeight's glove_mask exactly.
      * Tiny inputs (< min_kernel_tokens tokens) use a plain XLA gather, which
        beats any kernel launch.
    """
    B, S = ids.shape
    n_V, n_d = mask_table.shape
    assert n_d == 1
    n = B * S

    table1d = mask_table.astype(jnp.float32).reshape(n_V)

    if n < min_kernel_tokens:
        out = jnp.take(table1d, ids.reshape(-1).astype(jnp.int32),
                       mode="fill", fill_value=0.0)
        return out.reshape(B, S, 1)

    packed = _pack_mask_bits(mask_table)               # (ceil(n_V/32),) int32, SMEM

    # Lane-dense layout: flatten + zero-pad + reshape to (rows_pad, 128).
    rows = -(-n // _LANES)
    unit = 128 if rows > 128 else 8                    # block granularity
    rows_u = -(-rows // unit) * unit
    max_blk = max(unit, (rows_per_block // unit) * unit)
    if rows_u >= 2 * unit:
        # Guarantee >= 2 grid steps so "parallel" can shard across v7x's 2 TCs.
        half = -(-(rows_u // 2) // unit) * unit
        rows_blk = min(max_blk, half)
    else:
        rows_blk = rows_u
    rows_pad = -(-rows // rows_blk) * rows_blk
    n_pad = rows_pad * _LANES

    ids_flat = ids.reshape(-1).astype(jnp.int32)
    ids2d = jnp.pad(ids_flat, (0, n_pad - n)).reshape(rows_pad, _LANES)
    nrows = jnp.asarray([rows], dtype=jnp.int32)       # valid-row count (tail guard)

    # TODO(synk): once memory-bound, int16 ids / bf16 output would halve HBM
    # traffic on v6e/v7x; kept int32/f32 here for portability (v5e bf16 VPU).
    grid = (rows_pad // rows_blk,)
    out2d = pl.pallas_call(
        _word_weight_kernel,
        out_shape=jax.ShapeDtypeStruct((rows_pad, _LANES), jnp.float32),
        grid_spec=pl.GridSpec(
            grid=grid,
            in_specs=[
                # Bit-packed mask table, resident in SMEM for the whole grid.
                pl.BlockSpec(memory_space=pltpu.MemorySpace.SMEM),
                # Valid-row count scalar, SMEM.
                pl.BlockSpec(memory_space=pltpu.MemorySpace.SMEM),
                # Lane-dense id tiles.
                pl.BlockSpec((rows_blk, _LANES), lambda i: (i, 0)),
            ],
            out_specs=pl.BlockSpec((rows_blk, _LANES), lambda i: (i, 0)),
        ),
        compiler_params=pltpu.CompilerParams(
            dimension_semantics=("parallel",)),
    )(packed, nrows, ids2d)

    return out2d.reshape(-1)[:n].reshape(B, S, 1)


if __name__ == "__main__":
    key = jax.random.PRNGKey(0)
    k_mask, k_ids, k_ids2 = jax.random.split(key, 3)

    # Synthetic setup mirroring WordWeight.__init__:
    #   vocab of 252 words + 4 specials -> n_V = 256, embedding dim = 1,
    #   glove_mask is a {0,1} table marking "valid attackable" tokens.
    n_V = 256
    mask_table = (jax.random.uniform(k_mask, (n_V, 1)) < 0.3).astype(jnp.float32)

    def ref_lookup(idx):
        return mask_table[idx.reshape(-1)].reshape(*idx.shape, 1)

    # 1) Small shape (B=2, S=8): force the Pallas kernel path.
    B, S = 2, 8
    ids = jax.random.randint(k_ids, (B, S), 0, n_V, dtype=jnp.int32)
    out = jax.block_until_ready(
        word_weight_forward(ids, mask_table, min_kernel_tokens=0))
    assert out.shape == (B, S, 1)
    assert jnp.array_equal(out, ref_lookup(ids))

    # 2) Same small shape through the default tiny-input bypass (XLA gather).
    out_bypass = jax.block_until_ready(word_weight_forward(ids, mask_table))
    assert jnp.array_equal(out_bypass, ref_lookup(ids))

    # 3) Multi-block grid (>=2 steps) with a ragged tail: exercises the
    #    parallel grid axis, the pl.when tail-chunk skip, and padded slicing.
    B2, S2 = 4, 4128   # 16512 tokens -> 129 rows of 128 -> 2 blocks of 128 rows
    ids2 = jax.random.randint(k_ids2, (B2, S2), 0, n_V, dtype=jnp.int32)
    out2 = jax.block_until_ready(
        word_weight_forward(ids2, mask_table, min_kernel_tokens=0))
    assert jnp.array_equal(out2, ref_lookup(ids2))

    print("KERNEL_OK")
</pallas_src>

<mosaic_0001>
module attributes {stable_mosaic.version = 11 : i64} {
  func.func @_word_weight_kernel(%arg0: i32, %arg1: memref<8xi32, #tpu.memory_space<smem>>, %arg2: memref<1xi32, #tpu.memory_space<smem>>, %arg3: memref<8x128xi32, #tpu.memory_space<vmem>>, %arg4: memref<8x128xf32, #tpu.memory_space<vmem>>) attributes {dimension_semantics = [#tpu.dimension_semantics<parallel>], iteration_bounds = array<i64: 1>, scalar_prefetch = 0 : i64, scratch_operands = 0 : i64, tpu.core_type = #tpu.core_type<tc>, window_params = [{transform_indices = @transform_0, window_bounds = array<i64: 8>}, {transform_indices = @transform_1, window_bounds = array<i64: 1>}, {transform_indices = @transform_2, window_bounds = array<i64: 8, 128>}, {transform_indices = @transform_3, window_bounds = array<i64: 8, 128>}]} {
    %c8_i32 = arith.constant 8 : i32
    %0 = arith.muli %arg0, %c8_i32 : i32
    %c0 = arith.constant 0 : index
    %1 = memref.load %arg2[%c0] : memref<1xi32, #tpu.memory_space<smem>>
    %c0_i32 = arith.constant 0 : i32
    %c8_i32_0 = arith.constant 8 : i32
    %2 = arith.muli %c0_i32, %c8_i32_0 : i32
    %3 = tpu.assume_multiple %2, 8 : i32
    %4 = arith.addi %0, %3 : i32
    %5 = arith.cmpi slt, %4, %1 : i32
    %6 = arith.extui %5 : i1 to i32
    %c0_i32_1 = arith.constant 0 : i32
    %7 = arith.cmpi ne, %6, %c0_i32_1 : i32
    scf.if %7 {
      %8 = arith.index_cast %3 : i32 to index
      %c0_2 = arith.constant 0 : index
      %9 = vector.load %arg3[%8, %c0_2] : memref<8x128xi32, #tpu.memory_space<vmem>>, vector<8x128xi32>
      %c5_i32 = arith.constant 5 : i32
      %10 = vector.broadcast %c5_i32 : i32 to vector<8x128xi32>
      %11 = arith.shrsi %9, %10 : vector<8x128xi32>
      %c31_i32 = arith.constant 31 : i32
      %12 = vector.broadcast %c31_i32 : i32 to vector<8x128xi32>
      %13 = arith.andi %9, %12 : vector<8x128xi32>
      %c0_i32_3 = arith.constant 0 : i32
      %14 = vector.broadcast %c0_i32_3 : i32 to vector<8x128xi32>
      %c0_i32_4 = arith.constant 0 : i32
      %15 = vector.broadcast %c0_i32_4 : i32 to vector<8x128xi32>
      %16 = arith.cmpi eq, %11, %15 : vector<8x128xi32>
      %c0_5 = arith.constant 0 : index
      %17 = memref.load %arg1[%c0_5] : memref<8xi32, #tpu.memory_space<smem>>
      %18 = vector.broadcast %17 : i32 to vector<8x128xi32>
      %19 = arith.select %16, %18, %14 : vector<8x128xi1>, vector<8x128xi32>
      %c1_i32_6 = arith.constant 1 : i32
      %20 = vector.broadcast %c1_i32_6 : i32 to vector<8x128xi32>
      %21 = arith.cmpi eq, %11, %20 : vector<8x128xi32>
      %c1 = arith.constant 1 : index
      %22 = memref.load %arg1[%c1] : memref<8xi32, #tpu.memory_space<smem>>
      %23 = vector.broadcast %22 : i32 to vector<8x128xi32>
      %24 = arith.select %21, %23, %19 : vector<8x128xi1>, vector<8x128xi32>
      %c2_i32 = arith.constant 2 : i32
      %25 = vector.broadcast %c2_i32 : i32 to vector<8x128xi32>
      %26 = arith.cmpi eq, %11, %25 : vector<8x128xi32>
      %c2 = arith.constant 2 : index
      %27 = memref.load %arg1[%c2] : memref<8xi32, #tpu.memory_space<smem>>
      %28 = vector.broadcast %27 : i32 to vector<8x128xi32>
      %29 = arith.select %26, %28, %24 : vector<8x128xi1>, vector<8x128xi32>
      %c3_i32 = arith.constant 3 : i32
      %30 = vector.broadcast %c3_i32 : i32 to vector<8x128xi32>
      %31 = arith.cmpi eq, %11, %30 : vector<8x128xi32>
      %c3 = arith.constant 3 : index
      %32 = memref.load %arg1[%c3] : memref<8xi32, #tpu.memory_space<smem>>
      %33 = vector.broadcast %32 : i32 to vector<8x128xi32>
      %34 = arith.select %31, %33, %29 : vector<8x128xi1>, vector<8x128xi32>
      %c4_i32 = arith.constant 4 : i32
      %35 = vector.broadcast %c4_i32 : i32 to vector<8x128xi32>
      %36 = arith.cmpi eq, %11, %35 : vector<8x128xi32>
      %c4 = arith.constant 4 : index
      %37 = memref.load %arg1[%c4] : memref<8xi32, #tpu.memory_space<smem>>
      %38 = vector.broadcast %37 : i32 to vector<8x128xi32>
      %39 = arith.select %36, %38, %34 : vector<8x128xi1>, vector<8x128xi32>
      %c5_i32_7 = arith.constant 5 : i32
      %40 = vector.broadcast %c5_i32_7 : i32 to vector<8x128xi32>
      %41 = arith.cmpi eq, %11, %40 : vector<8x128xi32>
      %c5 = arith.constant 5 : index
      %42 = memref.load %arg1[%c5] : memref<8xi32, #tpu.memory_space<smem>>
      %43 = vector.broadcast %42 : i32 to vector<8x128xi32>
      %44 = arith.select %41, %43, %39 : vector<8x128xi1>, vector<8x128xi32>
      %c6_i32 = arith.constant 6 : i32
      %45 = vector.broadcast %c6_i32 : i32 to vector<8x128xi32>
      %46 = arith.cmpi eq, %11, %45 : vector<8x128xi32>
      %c6 = arith.constant 6 : index
      %47 = memref.load %arg1[%c6] : memref<8xi32, #tpu.memory_space<smem>>
      %48 = vector.broadcast %47 : i32 to vector<8x128xi32>
      %49 = arith.select %46, %48, %44 : vector<8x128xi1>, vector<8x128xi32>
      %c7_i32 = arith.constant 7 : i32
      %50 = vector.broadcast %c7_i32 : i32 to vector<8x128xi32>
      %51 = arith.cmpi eq, %11, %50 : vector<8x128xi32>
      %c7 = arith.constant 7 : index
      %52 = memref.load %arg1[%c7] : memref<8xi32, #tpu.memory_space<smem>>
      %53 = vector.broadcast %52 : i32 to vector<8x128xi32>
      %54 = arith.select %51, %53, %49 : vector<8x128xi1>, vector<8x128xi32>
      %55 = arith.shrsi %54, %13 : vector<8x128xi32>
      %c1_i32_8 = arith.constant 1 : i32
      %56 = vector.broadcast %c1_i32_8 : i32 to vector<8x128xi32>
      %57 = arith.andi %55, %56 : vector<8x128xi32>
      %58 = arith.sitofp %57 : vector<8x128xi32> to vector<8x128xf32>
      %59 = arith.index_cast %3 : i32 to index
      %c0_9 = arith.constant 0 : index
      %60 = vector.load %arg4[%59, %c0_9] : memref<8x128xf32, #tpu.memory_space<vmem>>, vector<8x128xf32>
      tpu.vector_store %arg4[%59, %c0_9], %58 {strides = array<i32>} : memref<8x128xf32, #tpu.memory_space<vmem>>, vector<8x128xf32>,
    } else {
    }
    %c1_i32 = arith.constant 1 : i32
    return
  }
  func.func @transform_0(%arg0: i32) -> i32 {
    %c0_i32 = arith.constant 0 : i32
    %c0_i32_0 = arith.constant 0 : i32
    return %c0_i32 : i32
  }
  func.func @transform_1(%arg0: i32) -> i32 {
    %c0_i32 = arith.constant 0 : i32
    %c0_i32_0 = arith.constant 0 : i32
    return %c0_i32 : i32
  }
  func.func @transform_2(%arg0: i32) -> (i32, i32) {
    %c0_i32 = arith.constant 0 : i32
    %c0_i32_0 = arith.constant 0 : i32
    return %arg0, %c0_i32 : i32, i32
  }
  func.func @transform_3(%arg0: i32) -> (i32, i32) {
    %c0_i32 = arith.constant 0 : i32
    %c0_i32_0 = arith.constant 0 : i32
    return %arg0, %c0_i32 : i32, i32
  }
}

</mosaic_0001>

<bundles_post_ra>
// kernel: tpu_custom_call.1
= control target key start
LH: loop header
LB: loop body
LE: loop exit
PB: predicated region body
PF: predicated region fallthrough
CT: control target
= control target key end

     0   :  { %9 = vsyncpa [#allocation6], 0  ;;  %s230_s0 = inlined_call_operand.vmem [shape: s32[8], index: 0, kind: input, shape index: {}]   ;;  %s231_s1 = inlined_call_operand.<no memory space> [shape: s32[1], index: 1, kind: input, shape index: {}]   ;;  %s232_s2 = inlined_call_operand.hbm [shape: s32[8,128], index: 2, kind: input, shape index: {}]   ;;  %s233_s3 = inlined_call_operand.hbm [shape: f32[8,128], index: 3, kind: output, shape index: {}]  }
   0x1   :  { %10 = vsyncpa [#allocation4], 0 }
   0x2   :  { %11 = vsyncpa [#allocation5], 0  ;;  %s18_s14 = sshll.u32 %s230_s0, 4  ;;  %s19_s14 = int_to_ptr.vmem [resolvable:$true] %s18_s14 }
   0x3   :  { %s115_s15 = scalar_lea.vmem %s19_s14, 16  ;;  %p120_p1 = scmp.lt.s32.totalorder %s19_s14, %s19_s14 }
   0x4   :  { %p116_p0 = scmp.ne.s32.totalorder %s19_s14, %s115_s15  ;;  %p121_p2 = scmp.lt.s32.totalorder %s115_s15, %s115_s15 }
   0x6   :  { %p122_p3 = por %p121_p2, %p120_p1 }
   0x8   :  { %p123_p4 = pnand %p122_p3, %p116_p0 }
   0xa   :  { %126 = shalt.err (!%p123_p4)
}
   0xb   :  { %s177_s16 = smov [#allocation3]   ;;  %s178_s17 = smov [#allocation7]  }
   0xc   :  { %21 = dma.vmem_to_smem %s19_s14, 16, %s177_s16, [#allocation6]  }
   0xd   :  { %s30_s18 = sshll.u32 %s178_s17, 4  ;;  %s127_s21 = scalar_lea.hbm %s232_s2, 128  ;;  %s31_s18 = int_to_ptr.vmem [resolvable:$true] %s30_s18 }
   0xe   :  { %p128_p5 = scmp.ne.s32.totalorder %s232_s2, %s127_s21  ;;  %p131_p6 = scmp.lt.u32.totalorder %s127_s21, %s232_s2 }
  0x10   :  { %p133_p7 = pnand %p131_p6, %p128_p5 }
  0x12   :  { %136 = shalt.err (!%p133_p7)
}
  0x13   :  { %s137_s25 = scalar_lea.vmem %s31_s18, 128  ;;  %p142_p9 = scmp.lt.s32.totalorder %s31_s18, %s31_s18 }
  0x14   :  { %p138_p8 = scmp.ne.s32.totalorder %s31_s18, %s137_s25  ;;  %p143_p10 = scmp.lt.s32.totalorder %s137_s25, %s137_s25 }
  0x16   :  { %p144_p11 = por %p143_p10, %p142_p9 }
  0x18   :  { %p145_p12 = pnand %p144_p11, %p138_p8 }
  0x1a   :  { %148 = shalt.err (!%p145_p12)
}
  0x1b   :  { %33 = dma.hbm_to_vmem [thread:$0]  %s232_s2, 128, %s31_s18, [#allocation4]  }
  0x1c   :  { %171 = dma.done.wait [#allocation6], 16  }
  0x1d   :  { %172 = vsyncadd [#allocation6], 4294967280 }
  0x1e   :  { %173 = dma.done.wait [#allocation4], 128  }
  0x1f   :  { %174 = vsyncadd [#allocation4], 4294967168 }
  0x20   :  { %40 = sfence }
  0x21   :  { %p104_p13 = scmp.le.s32.totalorder %s231_s1, 0 }
  0x22   :  { %v48_v0 = vld [vmem:[#allocation7] sm:$0xff] (!%p104_p13)  ;;  %s52_s30 = sld [smem:[#allocation3]] (!%p104_p13)  ;;  %s105_s4 = sld [smem:[#allocation3 + $0x1]] (!%p104_p13) }
  0x23   :  { %47 = sbr.rel (%p104_p13) target bundleno = 56 (0x38), region = 25  ;;  %v49_v1 = vshra.s32 (!%p104_p13), %v48_v0, 5  ;;  %s106_s5 = sld [smem:[#allocation3 + $0x2]] (!%p104_p13)  ;;  %v50_v13 = vand.u32 (!%p104_p13), 31, %v48_v0 }
  0x24   :  { %s107_s6 = sld [smem:[#allocation3 + $0x3]] (!%p104_p13)  ;;  %s108_s7 = sld [smem:[#allocation3 + $0x4]] (!%p104_p13) }
  0x25   :  { %s109_s8 = sld [smem:[#allocation3 + $0x5]] (!%p104_p13)  ;;  %s110_s9 = sld [smem:[#allocation3 + $0x6]] (!%p104_p13)  ;;  %vm51_vm0 = vcmp.eq.s32.totalorder (!%p104_p13), %v49_v1, 0  ;;  %vm55_vm1 = vcmp.eq.s32.totalorder (!%p104_p13), %v49_v1, 1  ;;  %vm59_vm2 = vcmp.eq.s32.totalorder (!%p104_p13), %v49_v1, 2  ;;  %vm63_vm3 = vcmp.eq.s32.totalorder (!%p104_p13), %v49_v1, 3 }
  0x26   :  { %s111_s2 = sld [smem:[#allocation3 + $0x7]] (!%p104_p13)  ;;  %vm67_vm4 = vcmp.eq.s32.totalorder (!%p104_p13), %v49_v1, 4  ;;  %vm71_vm5 = vcmp.eq.s32.totalorder (!%p104_p13), %v49_v1, 5  ;;  %vm75_vm6 = vcmp.eq.s32.totalorder (!%p104_p13), %v49_v1, 6  ;;  %vm79_vm7 = vcmp.eq.s32.totalorder (!%p104_p13), %v49_v1, 7 }
  0x28   :  { %v53_v2 = vstv (!%p104_p13), %s52_s30  ;;  %v57_v3 = vstv (!%p104_p13), %s105_s4 }
  0x29   :  { %v54_v4 = vsel (!%p104_p13), %vm51_vm0, %v53_v2, 0  ;;  %v61_v5 = vstv (!%p104_p13), %s106_s5 }
  0x2a   :  { %v65_v6 = vstv %s107_s6  ;;  %v58_v7 = vsel %vm55_vm1, %v57_v3, %v54_v4  ;;  %v69_v8 = vstv %s108_s7 }
  0x2b   :  { %v62_v9 = vsel %vm59_vm2, %v61_v5, %v58_v7  ;;  %v73_v10 = vstv %s109_s8  ;;  %v77_v12 = vstv %s110_s9 }
  0x2c   :  { %v66_v11 = vsel %vm63_vm3, %v65_v6, %v62_v9  ;;  %v81_v15 = vstv %s111_s2 }
  0x2d   :  { %v70_v14 = vsel %vm67_vm4, %v69_v8, %v66_v11 }
  0x2e   :  { %v74_v16 = vsel %vm71_vm5, %v73_v10, %v70_v14 }
  0x2f   :  { %v78_v17 = vsel %vm75_vm6, %v77_v12, %v74_v16 }
  0x30   :  { %v82_v18 = vsel %vm79_vm7, %v81_v15, %v78_v17 }
  0x31   :  { %v83_v19 = vshra.s32 %v82_v18, %v50_v13 }
  0x33   :  { %v84_v20 = vand.u32 1, %v83_v19 }
  0x35   :  { %v85_v21 = vcvt.s32.f32 %v84_v20 }
  0x37   :  { %86 = vst [vmem:[#allocation8] sm:$0xff] %v85_v21 }
  0x38 PF:  { %s179_s1 = smov [#allocation8]  }
  0x39   :  { %s93_s10 = sshll.u32 %s179_s1, 4  ;;  %s94_s10 = int_to_ptr.vmem [resolvable:$true] %s93_s10 }
  0x3a   :  { %s149_s11 = scalar_lea.vmem %s94_s10, 128  ;;  %p154_p1 = scmp.lt.s32.totalorder %s94_s10, %s94_s10 }
  0x3b   :  { %p150_p0 = scmp.ne.s32.totalorder %s94_s10, %s149_s11  ;;  %p155_p2 = scmp.lt.s32.totalorder %s149_s11, %s149_s11 }
  0x3d   :  { %p156_p3 = por %p155_p2, %p154_p1 }
  0x3f   :  { %p157_p4 = pnand %p156_p3, %p150_p0 }
  0x41   :  { %160 = shalt.err (!%p157_p4)
}
  0x42   :  { %s161_s14 = scalar_lea.hbm %s233_s3, 128 }
  0x43   :  { %p162_p5 = scmp.ne.s32.totalorder %s233_s3, %s161_s14  ;;  %p165_p6 = scmp.lt.u32.totalorder %s161_s14, %s233_s3 }
  0x45   :  { %p167_p7 = pnand %p165_p6, %p162_p5 }
  0x47   :  { %170 = shalt.err (!%p167_p7)
}
  0x48   :  { %96 = dma.vmem_to_hbm [thread:$0]  %s94_s10, 128, %s233_s3, [#allocation5]  }
  0x49   :  { %175 = dma.done.wait [#allocation5], 128  }
  0x4a   :  { %176 = vsyncadd [#allocation5], 4294967168 }
  0x4b   :  { %100 = vsyncpa [#allocation4], 1 }
  0x4c   :  { %101 = vsyncpa [#allocation5], 1 }
  0x4d   :  { %102 = vsyncpa [#allocation6], 1 }

</bundles_post_ra>
